<compile_context>
chip_gen: v6e
topology: v6e:2x2x1
jax: 0.10.0
libtpu: 0.0.40
codegen_flags: <defaults>
</compile_context>

<pallas_src>
import functools

import jax
import jax.numpy as jnp
from jax import lax
from jax.experimental import pallas as pl
from jax.experimental.pallas import tpu as pltpu


# ------------------------- fused MoE dispatch+FFN kernel ------------------------- #

def fused_moe_ffn_kernel(
    # scalar-prefetch (SMEM)
    slot_token_ref,     # int32 [E*cap_p]  token index held by each expert slot
    counts_ref,         # int32 [E]        tokens routed to each expert (<= capacity)
    # inputs
    x_hbm,              # [N, dm]   tokens, left in HBM (memory_space=pl.ANY)
    prob_ref,           # (TM, 1)   route_prob_max per slot (VMEM block)
    w1_ref,             # (dm, TF)  W1[e][:, f-tile]
    b1_ref,             # (1,  TF)
    w2_ref,             # (TF, dm)  W2[e][f-tile, :]
    b2_ref,             # (1,  dm)
    # output
    out_hbm,            # [N, dm]   written by DMA scatter (memory_space=pl.ANY)
    # scratch
    x_tile,             # VMEM (TM, dm) gathered tokens of this (expert, m) tile
    y_tile,             # VMEM (TM, dm) staging buffer for the output scatter
    acc,                # VMEM (TM, dm) f32 accumulator over the d_ff reduction
    sem,                # DMA semaphores (2,): 0 = gather, 1 = scatter
    *, cap_p, tm,
):
    e = pl.program_id(0)
    m = pl.program_id(1)
    f = pl.program_id(2)
    nf = pl.num_programs(2)

    base = m * tm
    # number of real tokens in this capacity tile (the rest is padding)
    nvalid = jnp.clip(counts_ref[e] - base, 0, tm)

    # ---- dispatch: gather this tile's token rows straight from HBM (f == 0) ----
    @pl.when(f == 0)
    def _dispatch():
        def start(r, c):
            tok = slot_token_ref[e * cap_p + base + r]
            pltpu.make_async_copy(x_hbm.at[tok], x_tile.at[r], sem.at[0]).start()
            return c
        lax.fori_loop(0, nvalid, start, 0)

        def wait(r, c):
            pltpu.make_async_copy(x_hbm.at[0], x_tile.at[0], sem.at[0]).wait()
            return c
        lax.fori_loop(0, nvalid, wait, 0)

        acc[...] = jnp.zeros_like(acc)

    # ---- expert FFN, tiled over d_ff:  acc += relu(x @ W1_f + b1_f) @ W2_f ----
    h = jnp.dot(x_tile[...], w1_ref[...], preferred_element_type=jnp.float32)
    h = jnp.maximum(h + b1_ref[...], 0.0)
    acc[...] += jnp.dot(h.astype(w2_ref.dtype), w2_ref[...],
                        preferred_element_type=jnp.float32)

    # ---- epilogue: + b2, * route_prob, scatter rows back to token order ----
    @pl.when(f == nf - 1)
    def _combine():
        y = (acc[...] + b2_ref[...]) * prob_ref[...]
        y_tile[...] = y.astype(y_tile.dtype)

        def start(r, c):
            tok = slot_token_ref[e * cap_p + base + r]
            pltpu.make_async_copy(y_tile.at[r], out_hbm.at[tok], sem.at[1]).start()
            return c
        lax.fori_loop(0, nvalid, start, 0)

        def wait(r, c):
            pltpu.make_async_copy(y_tile.at[0], out_hbm.at[0], sem.at[1]).wait()
            return c
        lax.fori_loop(0, nvalid, wait, 0)


def fused_switch_ffn(x_flat, slot_token, counts, slot_prob, w1, b1, w2, b2,
                     *, cap_p, tm, tf):
    """Fused dispatch + expert FFN + prob scaling + combine.

    x_flat     [N, dm]            tokens (any float dtype; f32 accumulation inside)
    slot_token [E*cap_p] int32    token index of each expert slot
    counts     [E]       int32    tokens per expert (already clamped to capacity)
    slot_prob  [E, cap_p, 1] f32  route_prob_max of the token in each slot
    w1 [E, dm, dff]  b1 [E, 1, dff]  w2 [E, dff, dm]  b2 [E, 1, dm]
    """
    N, dm = x_flat.shape
    E, _, dff = w1.shape
    assert dm % 128 == 0, "pad d_model to a multiple of 128 (lane width)"
    assert tf % 128 == 0 and dff % tf == 0, "d_ff tile must be a 128-multiple divisor"
    assert tm % 8 == 0 and cap_p % tm == 0

    n_m = cap_p // tm
    n_f = dff // tf

    # Explicit VMEM budget: double-buffered weight/bias/prob tiles + scratch.
    wsize = jnp.dtype(w1.dtype).itemsize
    xsize = jnp.dtype(x_flat.dtype).itemsize
    est = (2 * (2 * dm * tf * wsize + (tf + dm) * wsize + tm * 4)
           + tm * dm * (2 * xsize + 4))
    vmem_limit = int(min(max(4 * est, 32 * 1024 * 1024), 48 * 1024 * 1024))

    kernel = functools.partial(fused_moe_ffn_kernel, cap_p=cap_p, tm=tm)

    return pl.pallas_call(
        kernel,
        out_shape=jax.ShapeDtypeStruct((N, dm), x_flat.dtype),
        grid_spec=pltpu.PrefetchScalarGridSpec(
            num_scalar_prefetch=2,
            grid=(E, n_m, n_f),
            in_specs=[
                pl.BlockSpec(memory_space=pl.ANY),                             # x (HBM)
                pl.BlockSpec((None, tm, 1), lambda e, m, f, *_: (e, m, 0)),    # slot_prob
                pl.BlockSpec((None, dm, tf), lambda e, m, f, *_: (e, 0, f)),   # W1
                pl.BlockSpec((None, 1, tf),  lambda e, m, f, *_: (e, 0, f)),   # b1
                pl.BlockSpec((None, tf, dm), lambda e, m, f, *_: (e, f, 0)),   # W2
                pl.BlockSpec((None, 1, dm),  lambda e, m, f, *_: (e, 0, 0)),   # b2
            ],
            out_specs=pl.BlockSpec(memory_space=pl.ANY),                       # out (HBM)
            scratch_shapes=[
                pltpu.VMEM((tm, dm), x_flat.dtype),      # gathered tokens
                pltpu.VMEM((tm, dm), x_flat.dtype),      # output staging
                pltpu.VMEM((tm, dm), jnp.float32),       # f32 accumulator
                pltpu.SemaphoreType.DMA((2,)),
            ],
        ),
        compiler_params=pltpu.CompilerParams(
            dimension_semantics=("parallel", "parallel", "arbitrary"),
            vmem_limit_bytes=vmem_limit,
        ),
    )(slot_token, counts, x_flat, slot_prob, w1, b1, w2, b2)


# --------------------------------- forward pass --------------------------------- #

def switch_transformer_forward(x, params, *, n_experts, capacity_factor,
                               sequence_length, tm=64, tf=256):
    batch, seq, dm = x.shape
    x_flat = x.reshape(-1, dm)                                   # [N, dm]
    N = x_flat.shape[0]
    E = n_experts

    # ---- Switch (router): tiny [N, E] matmul + softmax/argmax, kept in XLA ----
    # TODO(synk): pad the E lane dim to 128 / fold the router into the kernel.
    logits = x_flat @ params["w_router"]                         # [N, E]
    probs = jax.nn.softmax(logits, axis=-1)
    route = jnp.argmax(probs, axis=-1)                           # [N]
    route_prob_max = jnp.max(probs, axis=-1)                     # [N]

    # capacity exactly as in the PyTorch code, padded up to the M-tile.
    capacity = int(capacity_factor * batch * sequence_length / n_experts)
    cap_p = max(tm, -(-capacity // tm) * tm)

    # Slot bookkeeping (integer-only work on [N, E]; cheap vs. the [N, dm] FFN).
    onehot = (route[:, None] == jnp.arange(E)[None, :]).astype(jnp.int32)
    pos = jnp.sum(jnp.cumsum(onehot, axis=0) * onehot, axis=1) - 1   # slot within expert
    counts = jnp.sum(onehot, axis=0)                                 # tokens per expert

    # drop_tokens=False requires counts <= capacity (the PyTorch code asserts
    # otherwise); overflow slots are redirected to a dump entry and dropped.
    # TODO(synk): residual pass-through (prob=1.0) for dropped tokens, as in
    #             the drop_tokens=True path.
    valid = pos < capacity
    dest = jnp.where(valid, route * cap_p + pos, E * cap_p).astype(jnp.int32)
    slot_token = jnp.zeros((E * cap_p + 1,), jnp.int32).at[dest].set(
        jnp.arange(N, dtype=jnp.int32))[:E * cap_p]
    slot_prob = jnp.zeros((E * cap_p + 1,), jnp.float32).at[dest].set(
        route_prob_max.astype(jnp.float32))[:E * cap_p].reshape(E, cap_p, 1)
    counts_c = jnp.minimum(counts, capacity).astype(jnp.int32)

    # _AllToAll -> identity on a single device (expert parallelism folded into
    # the kernel's expert grid axis).
    out_flat = fused_switch_ffn(
        x_flat, slot_token, counts_c, slot_prob,
        params["w1"], params["b1"], params["w2"], params["b2"],
        cap_p=cap_p, tm=tm, tf=tf)

    # Dropout: identity (eval mode).
    # TODO(synk): RouterLoadBalancingLoss singleton bookkeeping not replicated.
    return out_flat.reshape(batch, seq, dm)


# ------------------------------------- main -------------------------------------- #

if __name__ == "__main__":
    # Small but lane-aligned shapes (d_model / d_ff multiples of 128).
    batch, seq, d_model, d_ff = 2, 64, 128, 512
    n_experts = 4
    sequence_length = seq
    capacity_factor = float(n_experts)   # capacity = batch*seq -> no token dropped
    dtype = jnp.float32                  # bf16 also works; f32 keeps the check tight

    key = jax.random.PRNGKey(0)
    kx, kr, k1, kb1, k2, kb2 = jax.random.split(key, 6)

    x = jax.random.normal(kx, (batch, seq, d_model), dtype)
    params = {
        "w_router": 0.1 * jax.random.normal(kr, (d_model, n_experts), dtype),
        "w1": 0.1 * jax.random.normal(k1, (n_experts, d_model, d_ff), dtype),
        "b1": 0.01 * jax.random.normal(kb1, (n_experts, 1, d_ff), dtype),
        "w2": 0.1 * jax.random.normal(k2, (n_experts, d_ff, d_model), dtype),
        "b2": 0.01 * jax.random.normal(kb2, (n_experts, 1, d_model), dtype),
    }

    fwd = jax.jit(functools.partial(
        switch_transformer_forward,
        n_experts=n_experts, capacity_factor=capacity_factor,
        sequence_length=sequence_length, tm=64, tf=256))
    out = jax.block_until_ready(fwd(x, params))

    # Pure-JAX reference.
    x_flat = x.reshape(-1, d_model)
    probs = jax.nn.softmax(x_flat @ params["w_router"], axis=-1)
    route = jnp.argmax(probs, axis=-1)
    pmax = jnp.max(probs, axis=-1)
    w1g = params["w1"][route]
    w2g = params["w2"][route]
    b1g = params["b1"][route][:, 0, :]
    b2g = params["b2"][route][:, 0, :]
    h = jnp.maximum(jnp.einsum("nd,ndf->nf", x_flat, w1g) + b1g, 0.0)
    ref = (jnp.einsum("nf,nfd->nd", h, w2g) + b2g) * pmax[:, None]
    ref = ref.reshape(batch, seq, d_model)

    assert out.shape == (batch, seq, d_model)
    assert jnp.allclose(out, ref, atol=1e-2, rtol=1e-2), "mismatch vs reference"

    print("KERNEL_OK")
</pallas_src>

<mosaic_0001>
module attributes {stable_mosaic.version = 11 : i64} {
  func.func @fused_moe_ffn_kernel(%arg0: i32, %arg1: i32, %arg2: i32, %arg3: memref<512xi32, #tpu.memory_space<smem>>, %arg4: memref<4xi32, #tpu.memory_space<smem>>, %arg5: memref<128x128xf32, #tpu.memory_space<any>>, %arg6: memref<1x64x1xf32, #tpu.memory_space<vmem>>, %arg7: memref<1x128x256xf32, #tpu.memory_space<vmem>>, %arg8: memref<1x1x256xf32, #tpu.memory_space<vmem>>, %arg9: memref<1x256x128xf32, #tpu.memory_space<vmem>>, %arg10: memref<1x1x128xf32, #tpu.memory_space<vmem>>, %arg11: memref<128x128xf32, #tpu.memory_space<any>>, %arg12: memref<64x128xf32, #tpu.memory_space<vmem>>, %arg13: memref<64x128xf32, #tpu.memory_space<vmem>>, %arg14: memref<64x128xf32, #tpu.memory_space<vmem>>, %arg15: memref<2x!tpu.dma_semaphore, #tpu.memory_space<semaphore_mem>>) attributes {dimension_semantics = [#tpu.dimension_semantics<parallel>, #tpu.dimension_semantics<parallel>, #tpu.dimension_semantics<arbitrary>], iteration_bounds = array<i64: 4, 2, 2>, scalar_prefetch = 2 : i64, scratch_operands = 4 : i64, tpu.core_type = #tpu.core_type<tc>, window_params = [{}, {transform_indices = @transform_1, window_bounds = array<i64: 1, 64, 1>}, {transform_indices = @transform_2, window_bounds = array<i64: 1, 128, 256>}, {transform_indices = @transform_3, window_bounds = array<i64: 1, 1, 256>}, {transform_indices = @transform_4, window_bounds = array<i64: 1, 256, 128>}, {transform_indices = @transform_5, window_bounds = array<i64: 1, 1, 128>}, {}]} {
    %c64_i32 = arith.constant 64 : i32
    %0 = arith.muli %arg1, %c64_i32 : i32
    %1 = arith.index_cast %arg0 : i32 to index
    %2 = memref.load %arg4[%1] : memref<4xi32, #tpu.memory_space<smem>>
    %3 = arith.subi %2, %0 : i32
    %c0_i32 = arith.constant 0 : i32
    %c64_i32_0 = arith.constant 64 : i32
    %4 = arith.maxsi %c0_i32, %3 : i32
    %5 = arith.minsi %c64_i32_0, %4 : i32
    %c0_i32_1 = arith.constant 0 : i32
    %6 = arith.cmpi eq, %arg2, %c0_i32_1 : i32
    %7 = arith.extui %6 : i1 to i32
    %c0_i32_2 = arith.constant 0 : i32
    %8 = arith.cmpi ne, %7, %c0_i32_2 : i32
    scf.if %8 {
      %c0_i32_20 = arith.constant 0 : i32
      %c0_i32_21 = arith.constant 0 : i32
      %28 = arith.subi %5, %c0_i32_21 : i32
      %29 = arith.addi %c0_i32_21, %28 : i32
      %c1_i32_22 = arith.constant 1 : i32
      scf.for %arg16 = %c0_i32_21 to %29 step %c1_i32_22  : i32 {
        %c128_i32 = arith.constant 128 : i32
        %34 = arith.muli %arg0, %c128_i32 : i32
        %35 = arith.addi %34, %0 : i32
        %36 = arith.addi %35, %arg16 : i32
        %37 = arith.index_cast %36 : i32 to index
        %38 = memref.load %arg3[%37] : memref<512xi32, #tpu.memory_space<smem>>
        %c0_i32_29 = arith.constant 0 : i32
        %c0_i32_30 = arith.constant 0 : i32
        %39 = tpu.memref_slice %arg5[%38, %c0_i32_30] : memref<128x128xf32, #tpu.memory_space<any>> -> memref<1x128xf32, #tpu.memory_space<any>>
        %40 = tpu.memref_squeeze %39 : memref<1x128xf32, #tpu.memory_space<any>> -> memref<128xf32, #tpu.memory_space<any>>
        %c0_i32_31 = arith.constant 0 : i32
        %41 = tpu.memref_slice %arg12[%arg16, %c0_i32_31] : memref<64x128xf32, #tpu.memory_space<vmem>> -> memref<1x128xf32, #tpu.memory_space<vmem>>
        %42 = tpu.memref_squeeze %41 : memref<1x128xf32, #tpu.memory_space<vmem>> -> memref<128xf32, #tpu.memory_space<vmem>>
        %43 = tpu.memref_slice %arg15[%c0_i32_29] : memref<2x!tpu.dma_semaphore, #tpu.memory_space<semaphore_mem>> -> memref<1x!tpu.dma_semaphore, #tpu.memory_space<semaphore_mem>>
        %44 = tpu.memref_squeeze %43 : memref<1x!tpu.dma_semaphore, #tpu.memory_space<semaphore_mem>> -> memref<!tpu.dma_semaphore, #tpu.memory_space<semaphore_mem>>
        tpu.enqueue_dma source(%40 : memref<128xf32, #tpu.memory_space<any>>) target(%42 : memref<128xf32, #tpu.memory_space<vmem>>) target_semaphore(%44 : memref<!tpu.dma_semaphore, #tpu.memory_space<semaphore_mem>>)
      }
      %c0_i32_23 = arith.constant 0 : i32
      %c0_i32_24 = arith.constant 0 : i32
      %30 = arith.subi %5, %c0_i32_24 : i32
      %31 = arith.addi %c0_i32_24, %30 : i32
      %c1_i32_25 = arith.constant 1 : i32
      scf.for %arg16 = %c0_i32_24 to %31 step %c1_i32_25  : i32 {
        %c0_i32_29 = arith.constant 0 : i32
        %c0_i32_30 = arith.constant 0 : i32
        %c0_i32_31 = arith.constant 0 : i32
        %c0_i32_32 = arith.constant 0 : i32
        %34 = tpu.memref_slice %arg5[%c0_i32_29, %c0_i32_32] : memref<128x128xf32, #tpu.memory_space<any>> -> memref<1x128xf32, #tpu.memory_space<any>>
        %35 = tpu.memref_squeeze %34 : memref<1x128xf32, #tpu.memory_space<any>> -> memref<128xf32, #tpu.memory_space<any>>
        %c0_i32_33 = arith.constant 0 : i32
        %36 = tpu.memref_slice %arg12[%c0_i32_30, %c0_i32_33] : memref<64x128xf32, #tpu.memory_space<vmem>> -> memref<1x128xf32, #tpu.memory_space<vmem>>
        %37 = tpu.memref_squeeze %36 : memref<1x128xf32, #tpu.memory_space<vmem>> -> memref<128xf32, #tpu.memory_space<vmem>>
        %38 = tpu.memref_slice %arg15[%c0_i32_31] : memref<2x!tpu.dma_semaphore, #tpu.memory_space<semaphore_mem>> -> memref<1x!tpu.dma_semaphore, #tpu.memory_space<semaphore_mem>>
        %39 = tpu.memref_squeeze %38 : memref<1x!tpu.dma_semaphore, #tpu.memory_space<semaphore_mem>> -> memref<!tpu.dma_semaphore, #tpu.memory_space<semaphore_mem>>
        tpu.wait_dma2 semaphore(%39 : memref<!tpu.dma_semaphore, #tpu.memory_space<semaphore_mem>>) src(%35 : memref<128xf32, #tpu.memory_space<any>>) dst(%37 : memref<128xf32, #tpu.memory_space<vmem>>)
      }
      %cst_26 = arith.constant 0.000000e+00 : f32
      %32 = vector.broadcast %cst_26 : f32 to vector<64x128xf32>
      %c0_27 = arith.constant 0 : index
      %c0_28 = arith.constant 0 : index
      %33 = vector.load %arg14[%c0_27, %c0_28] : memref<64x128xf32, #tpu.memory_space<vmem>>, vector<64x128xf32>
      tpu.vector_store %arg14[%c0_27, %c0_28], %32 {strides = array<i32>} : memref<64x128xf32, #tpu.memory_space<vmem>>, vector<64x128xf32>,
    } else {
    }
    %c0 = arith.constant 0 : index
    %c0_3 = arith.constant 0 : index
    %9 = vector.load %arg12[%c0, %c0_3] : memref<64x128xf32, #tpu.memory_space<vmem>>, vector<64x128xf32>
    %c0_4 = arith.constant 0 : index
    %c0_5 = arith.constant 0 : index
    %c0_6 = arith.constant 0 : index
    %10 = vector.load %arg7[%c0_4, %c0_5, %c0_6] : memref<1x128x256xf32, #tpu.memory_space<vmem>>, vector<1x128x256xf32>
    %11 = vector.shape_cast %10 : vector<1x128x256xf32> to vector<128x256xf32>
    %cst = arith.constant dense<0.000000e+00> : vector<64x256xf32>
    %12 = tpu.matmul %9, %11, %cst {dimension_numbers = #tpu.dot_dimension_numbers<[1], [0], [0], [1], [0, 0, 1, 1], [], []>} : vector<64x128xf32>, vector<128x256xf32>, vector<64x256xf32> -> vector<64x256xf32>
    %c0_7 = arith.constant 0 : index
    %c0_8 = arith.constant 0 : index
    %c0_9 = arith.constant 0 : index
    %13 = vector.load %arg8[%c0_7, %c0_8, %c0_9] : memref<1x1x256xf32, #tpu.memory_space<vmem>>, vector<1x1x256xf32>
    %14 = vector.shape_cast %13 : vector<1x1x256xf32> to vector<1x256xf32>
    %15 = vector.broadcast %14 : vector<1x256xf32> to vector<64x256xf32>
    %16 = arith.addf %12, %15 : vector<64x256xf32>
    %cst_10 = arith.constant 0.000000e+00 : f32
    %17 = vector.broadcast %cst_10 : f32 to vector<64x256xf32>
    %18 = arith.maximumf %16, %17 : vector<64x256xf32>
    %c0_11 = arith.constant 0 : index
    %c0_12 = arith.constant 0 : index
    %19 = vector.load %arg14[%c0_11, %c0_12] : memref<64x128xf32, #tpu.memory_space<vmem>>, vector<64x128xf32>
    %c0_13 = arith.constant 0 : index
    %c0_14 = arith.constant 0 : index
    %c0_15 = arith.constant 0 : index
    %20 = vector.load %arg9[%c0_13, %c0_14, %c0_15] : memref<1x256x128xf32, #tpu.memory_space<vmem>>, vector<1x256x128xf32>
    %21 = vector.shape_cast %20 : vector<1x256x128xf32> to vector<256x128xf32>
    %cst_16 = arith.constant dense<0.000000e+00> : vector<64x128xf32>
    %22 = tpu.matmul %18, %21, %cst_16 {dimension_numbers = #tpu.dot_dimension_numbers<[1], [0], [0], [1], [0, 0, 1, 1], [], []>} : vector<64x256xf32>, vector<256x128xf32>, vector<64x128xf32> -> vector<64x128xf32>
    %23 = arith.addf %19, %22 : vector<64x128xf32>
    %c0_17 = arith.constant 0 : index
    %c0_18 = arith.constant 0 : index
    %24 = vector.load %arg14[%c0_17, %c0_18] : memref<64x128xf32, #tpu.memory_space<vmem>>, vector<64x128xf32>
    tpu.vector_store %arg14[%c0_17, %c0_18], %23 {strides = array<i32>} : memref<64x128xf32, #tpu.memory_space<vmem>>, vector<64x128xf32>,
    %c1_i32 = arith.constant 1 : i32
    %25 = arith.cmpi eq, %arg2, %c1_i32 : i32
    %26 = arith.extui %25 : i1 to i32
    %c0_i32_19 = arith.constant 0 : i32
    %27 = arith.cmpi ne, %26, %c0_i32_19 : i32
    scf.if %27 {
      %c0_20 = arith.constant 0 : index
      %c0_21 = arith.constant 0 : index
      %28 = vector.load %arg14[%c0_20, %c0_21] : memref<64x128xf32, #tpu.memory_space<vmem>>, vector<64x128xf32>
      %c0_22 = arith.constant 0 : index
      %c0_23 = arith.constant 0 : index
      %c0_24 = arith.constant 0 : index
      %29 = vector.load %arg10[%c0_22, %c0_23, %c0_24] : memref<1x1x128xf32, #tpu.memory_space<vmem>>, vector<1x1x128xf32>
      %30 = vector.shape_cast %29 : vector<1x1x128xf32> to vector<1x128xf32>
      %31 = vector.broadcast %30 : vector<1x128xf32> to vector<64x128xf32>
      %32 = arith.addf %28, %31 : vector<64x128xf32>
      %c0_25 = arith.constant 0 : index
      %c0_26 = arith.constant 0 : index
      %c0_27 = arith.constant 0 : index
      %33 = vector.load %arg6[%c0_25, %c0_26, %c0_27] : memref<1x64x1xf32, #tpu.memory_space<vmem>>, vector<1x64x1xf32>
      %34 = vector.shape_cast %33 : vector<1x64x1xf32> to vector<64x1xf32>
      %35 = vector.broadcast %34 : vector<64x1xf32> to vector<64x128xf32>
      %36 = arith.mulf %32, %35 : vector<64x128xf32>
      %c0_28 = arith.constant 0 : index
      %c0_29 = arith.constant 0 : index
      %37 = vector.load %arg13[%c0_28, %c0_29] : memref<64x128xf32, #tpu.memory_space<vmem>>, vector<64x128xf32>
      tpu.vector_store %arg13[%c0_28, %c0_29], %36 {strides = array<i32>} : memref<64x128xf32, #tpu.memory_space<vmem>>, vector<64x128xf32>,
      %c0_i32_30 = arith.constant 0 : i32
      %c0_i32_31 = arith.constant 0 : i32
      %38 = arith.subi %5, %c0_i32_31 : i32
      %39 = arith.addi %c0_i32_31, %38 : i32
      %c1_i32_32 = arith.constant 1 : i32
      scf.for %arg16 = %c0_i32_31 to %39 step %c1_i32_32  : i32 {
        %c128_i32 = arith.constant 128 : i32
        %42 = arith.muli %arg0, %c128_i32 : i32
        %43 = arith.addi %42, %0 : i32
        %44 = arith.addi %43, %arg16 : i32
        %45 = arith.index_cast %44 : i32 to index
        %46 = memref.load %arg3[%45] : memref<512xi32, #tpu.memory_space<smem>>
        %c1_i32_36 = arith.constant 1 : i32
        %c0_i32_37 = arith.constant 0 : i32
        %47 = tpu.memref_slice %arg13[%arg16, %c0_i32_37] : memref<64x128xf32, #tpu.memory_space<vmem>> -> memref<1x128xf32, #tpu.memory_space<vmem>>
        %48 = tpu.memref_squeeze %47 : memref<1x128xf32, #tpu.memory_space<vmem>> -> memref<128xf32, #tpu.memory_space<vmem>>
        %c0_i32_38 = arith.constant 0 : i32
        %49 = tpu.memref_slice %arg11[%46, %c0_i32_38] : memref<128x128xf32, #tpu.memory_space<any>> -> memref<1x128xf32, #tpu.memory_space<any>>
        %50 = tpu.memref_squeeze %49 : memref<1x128xf32, #tpu.memory_space<any>> -> memref<128xf32, #tpu.memory_space<any>>
        %51 = tpu.memref_slice %arg15[%c1_i32_36] : memref<2x!tpu.dma_semaphore, #tpu.memory_space<semaphore_mem>> -> memref<1x!tpu.dma_semaphore, #tpu.memory_space<semaphore_mem>>
        %52 = tpu.memref_squeeze %51 : memref<1x!tpu.dma_semaphore, #tpu.memory_space<semaphore_mem>> -> memref<!tpu.dma_semaphore, #tpu.memory_space<semaphore_mem>>
        tpu.enqueue_dma source(%48 : memref<128xf32, #tpu.memory_space<vmem>>) target(%50 : memref<128xf32, #tpu.memory_space<any>>) target_semaphore(%52 : memref<!tpu.dma_semaphore, #tpu.memory_space<semaphore_mem>>)
      }
      %c0_i32_33 = arith.constant 0 : i32
      %c0_i32_34 = arith.constant 0 : i32
      %40 = arith.subi %5, %c0_i32_34 : i32
      %41 = arith.addi %c0_i32_34, %40 : i32
      %c1_i32_35 = arith.constant 1 : i32
      scf.for %arg16 = %c0_i32_34 to %41 step %c1_i32_35  : i32 {
        %c0_i32_36 = arith.constant 0 : i32
        %c0_i32_37 = arith.constant 0 : i32
        %c1_i32_38 = arith.constant 1 : i32
        %c0_i32_39 = arith.constant 0 : i32
        %42 = tpu.memref_slice %arg13[%c0_i32_36, %c0_i32_39] : memref<64x128xf32, #tpu.memory_space<vmem>> -> memref<1x128xf32, #tpu.memory_space<vmem>>
        %43 = tpu.memref_squeeze %42 : memref<1x128xf32, #tpu.memory_space<vmem>> -> memref<128xf32, #tpu.memory_space<vmem>>
        %c0_i32_40 = arith.constant 0 : i32
        %44 = tpu.memref_slice %arg11[%c0_i32_37, %c0_i32_40] : memref<128x128xf32, #tpu.memory_space<any>> -> memref<1x128xf32, #tpu.memory_space<any>>
        %45 = tpu.memref_squeeze %44 : memref<1x128xf32, #tpu.memory_space<any>> -> memref<128xf32, #tpu.memory_space<any>>
        %46 = tpu.memref_slice %arg15[%c1_i32_38] : memref<2x!tpu.dma_semaphore, #tpu.memory_space<semaphore_mem>> -> memref<1x!tpu.dma_semaphore, #tpu.memory_space<semaphore_mem>>
        %47 = tpu.memref_squeeze %46 : memref<1x!tpu.dma_semaphore, #tpu.memory_space<semaphore_mem>> -> memref<!tpu.dma_semaphore, #tpu.memory_space<semaphore_mem>>
        tpu.wait_dma2 semaphore(%47 : memref<!tpu.dma_semaphore, #tpu.memory_space<semaphore_mem>>) src(%43 : memref<128xf32, #tpu.memory_space<vmem>>) dst(%45 : memref<128xf32, #tpu.memory_space<any>>)
      }
    } else {
    }
    return
  }
  func.func @transform_1(%arg0: i32, %arg1: i32, %arg2: i32, %arg3: memref<512xi32, #tpu.memory_space<smem>>, %arg4: memref<4xi32, #tpu.memory_space<smem>>) -> (i32, i32, i32) {
    %c0_i32 = arith.constant 0 : i32
    %c0_i32_0 = arith.constant 0 : i32
    return %arg0, %arg1, %c0_i32 : i32, i32, i32
  }
  func.func @transform_2(%arg0: i32, %arg1: i32, %arg2: i32, %arg3: memref<512xi32, #tpu.memory_space<smem>>, %arg4: memref<4xi32, #tpu.memory_space<smem>>) -> (i32, i32, i32) {
    %c0_i32 = arith.constant 0 : i32
    %c0_i32_0 = arith.constant 0 : i32
    return %arg0, %c0_i32, %arg2 : i32, i32, i32
  }
  func.func @transform_3(%arg0: i32, %arg1: i32, %arg2: i32, %arg3: memref<512xi32, #tpu.memory_space<smem>>, %arg4: memref<4xi32, #tpu.memory_space<smem>>) -> (i32, i32, i32) {
    %c0_i32 = arith.constant 0 : i32
    %c0_i32_0 = arith.constant 0 : i32
    return %arg0, %c0_i32, %arg2 : i32, i32, i32
  }
  func.func @transform_4(%arg0: i32, %arg1: i32, %arg2: i32, %arg3: memref<512xi32, #tpu.memory_space<smem>>, %arg4: memref<4xi32, #tpu.memory_space<smem>>) -> (i32, i32, i32) {
    %c0_i32 = arith.constant 0 : i32
    %c0_i32_0 = arith.constant 0 : i32
    return %arg0, %arg2, %c0_i32 : i32, i32, i32
  }
  func.func @transform_5(%arg0: i32, %arg1: i32, %arg2: i32, %arg3: memref<512xi32, #tpu.memory_space<smem>>, %arg4: memref<4xi32, #tpu.memory_space<smem>>) -> (i32, i32, i32) {
    %c0_i32 = arith.constant 0 : i32
    %c0_i32_0 = arith.constant 0 : i32
    %c0_i32_1 = arith.constant 0 : i32
    return %arg0, %c0_i32, %c0_i32_0 : i32, i32, i32
  }
}

</mosaic_0001>

<bundles_post_ra>
// kernel: switch_transformer_forward.1
= control target key start
LH: loop header
LB: loop body
LE: loop exit
PB: predicated region body
PF: predicated region fallthrough
CT: control target
= control target key end

     0   :  { %s1901_s0 = inlined_call_operand.vmem [shape: s32[512], index: 0, kind: input, shape index: {}]   ;;  %s1902_s2 = inlined_call_operand.vmem [shape: f32[128,128], index: 2, kind: input, shape index: {}]   ;;  %s1903_s3 = inlined_call_operand.vmem [shape: f32[4,128,1], index: 3, kind: input, shape index: {}]   ;;  %s1904_s4 = inlined_call_operand.hbm [shape: f32[4,128,512], index: 4, kind: input, shape index: {}]   ;;  %s1905_s5 = inlined_call_operand.vmem [shape: f32[4,1,512], index: 5, kind: input, shape index: {}]   ;;  %s1906_s6 = inlined_call_operand.hbm [shape: f32[4,512,128], index: 6, kind: input, shape index: {}]   ;;  %s1907_s7 = inlined_call_operand.vmem [shape: f32[4,1,128], index: 7, kind: input, shape index: {}]   ;;  %s1908_s8 = inlined_call_operand.hbm [shape: f32[128,128], index: 8, kind: output, shape index: {}]   ;;  %s1909_s1 = inlined_call_operand.vmem [shape: s32[4], index: 1, kind: input, shape index: {}]  }
   0x1   :  { %1915 = sst [smem:[#allocation29_spill]] %s1902_s2  ;;  %s13_s29 = sshll.u32 %s1901_s0, 4  ;;  %s14_s29 = int_to_ptr.vmem [resolvable:$true] %s13_s29 }
   0x2   :  { %1916 = sst [smem:[#allocation30_spill]] %s1904_s4  ;;  %s17_s10 = sshll.u32 %s1909_s1, 4  ;;  %s18_s10 = int_to_ptr.vmem [resolvable:$true] %s17_s10 }
   0x3   :  { %1917 = sst [smem:[#allocation31_spill]] %s1905_s5  ;;  %s1279_s11 = scalar_lea.vmem %s14_s29, 64 }
   0x4   :  { %1918 = sst [smem:[#allocation32_spill]] %s1908_s8  ;;  %p1280_p0 = scmp.ne.s32.totalorder %s14_s29, %s1279_s11 }
   0x5   :  { %p1284_p1 = scmp.lt.s32.totalorder %s14_s29, %s14_s29  ;;  %p1285_p2 = scmp.lt.s32.totalorder %s1279_s11, %s1279_s11 }
   0x7   :  { %p1286_p3 = por %p1285_p2, %p1284_p1 }
   0x9   :  { %p1287_p4 = pnand %p1286_p3, %p1280_p0 }
   0xb   :  { %1290 = shalt.err (!%p1287_p4)  }
   0xc   :  { %s1507_s12 = smov [#allocation7]   ;;  %s1291_s13 = scalar_lea.vmem %s18_s10, 16 }
   0xd   :  { %16 = dma.vmem_to_smem %s14_s29, 64, %s1507_s12, [#allocation6] }
   0xe   :  { %p1292_p5 = scmp.ne.s32.totalorder %s18_s10, %s1291_s13  ;;  %p1296_p6 = scmp.lt.s32.totalorder %s18_s10, %s18_s10 }
   0xf   :  { %p1297_p7 = scmp.lt.s32.totalorder %s1291_s13, %s1291_s13 }
  0x11   :  { %p1298_p8 = por %p1297_p7, %p1296_p6 }
  0x13   :  { %p1299_p9 = pnand %p1298_p8, %p1292_p5 }
  0x15   :  { %1302 = shalt.err (!%p1299_p9)  }
  0x16   :  { %s1508_s0 = smov [#allocation8]  }
  0x17   :  { %20 = dma.vmem_to_smem %s18_s10, 16, %s1508_s0, [#allocation6] }
  0x18   :  { %1437 = dma.done.wait [#allocation6], 80 }
  0x19   :  { %1438 = vsyncadd [#allocation6], 4294967216 }
  0x1a   :  { %22 = sfence }
  0x1b   :  { %23 = vsyncpa [#allocation10], 0 }
  0x1c   :  { %25 = vsyncpa [#allocation10 + $0x1], 0 }
  0x1d   :  { %26 = vsyncpa [#allocation12], 0 }
  0x1e   :  { %28 = vsyncpa [#allocation12 + $0x1], 0  ;;  %s1571_s1 = smov 0   ;;  %s1573_s14 = smov 0  }
  0x1f   :  { %s1575_s15 = smov 0   ;;  %s1577_s16 = smov 0  }
  0x20   :  { %s1579_s17 = smov 0   ;;  %s1581_s18 = smov 0  }
  0x21   :  { %s1583_s19 = smov 0   ;;  %s1585_s20 = smov 0  }
  0x22   :  { %s1587_s21 = smov 0   ;;  %s1589_s22 = smov 0  }
  0x23 LB: > { %1919 = sst [smem:[#allocation23_spill]] %s1461_s15  ;;  %s1046_s23 = sadd.s32 4294967295, %s1489_s22   ;;  %s1489_s22 = sphi %s1589_s22, %s34_s22   ;;  %s1485_s21 = sphi %s1587_s21, %s1944_s21   ;;  %s1481_s20 = sphi %s1585_s20, %s1937_s20   ;;  %s1477_s19 = sphi %s1583_s19, %s1943_s19   ;;  %s1473_s18 = sphi %s1581_s18, %s1942_s18   ;;  %s1469_s17 = sphi %s1579_s17, %s1935_s17   ;;  %s1465_s16 = sphi %s1577_s16, %s1941_s16   ;;  %s1461_s15 = sphi %s1575_s15, %s1934_s15   ;;  %s1457_s14 = sphi %s1573_s14, %s1940_s14   ;;  %s1453_s1 = sphi %s1571_s1, %s1939_s1  }
  0x24   : > { %1920 = sst [smem:[#allocation24_spill]] %s1481_s20  ;;  %s42_s24 = sadd.s32 1, %s1477_s19 }
  0x25   : > { %p43_p10 = scmp.ge.s32.totalorder %s42_s24, 2  ;;  %s45_s25 = sadd.s32 1, %s1481_s20 }
  0x26   : > { %s49_s26 = sadd.s32 1, %s1485_s21  ;;  %s79_s27 = sadd.s32 1, %s1461_s15 }
  0x27   : > { %s1946_s24 = smov (%p43_p10, %s42_s24), 0  ;;  %s1948_s25 = smov (!%p43_p10, %s45_s25), %s1481_s20 }
  0x28   : > { %1921 = sst [smem:[#allocation25_spill]] %s1946_s24  ;;  %s75_s28 = ssub.s32 %s1477_s19, %s1946_s24 }
  0x29   : > { %p85_p11 = scmp.ne.s32.totalorder %s1461_s15, %s1457_s14  ;;  %p47_p12 = scmp.ge.s32.totalorder %s1948_s25, 2 }
  0x2a   : > { %p86_p13 = scmp.eq.s32.totalorder %s1489_s22, 0  ;;  %p92_p0 = scmp.ne.s32.totalorder %s1457_s14, %s1453_s1 }
  0x2b   : > { %p93_p1 = scmp.eq.s32.totalorder %s1046_s23, 0  ;;  %s1950_s25 = smov (%p47_p12, %s1948_s25), 0 }
  0x2c   : > { %1922 = sst [smem:[#allocation26_spill]] %s1950_s25  ;;  %s1952_s26 = smov (!%p47_p12, %s49_s26), %s1485_s21 }
  0x2d   : > { %p1636_p2 = por %p86_p13, %p85_p11  ;;  %p1640_p3 = por %p93_p1, %p92_p0 }
  0x2e   : > { %p51_p4 = scmp.ge.s32.totalorder %s1952_s26, 4  ;;  %p1154_p5 = scmp.lt.s32.totalorder %s1489_s22, 16 }
  0x2f   : > { %s1646_s9 = sand.u32 1, %s1461_s15   ;;  %s1051_s13 = sshll.u32 %s1477_s19, 1 }
  0x30   : > { %s1954_s26 = smov (%p51_p4, %s1952_s26), 0  ;;  %s1050_s10 = sshll.u32 %s1646_s9, 8 }
  0x31   : > { %1925 = sst [smem:[#allocation27_spill]] %s1954_s26  ;;  %s74_s11 = ssub.s32 %s1485_s21, %s1954_s26 }
  0x32   : > { %s76_s12 = sor.u32 %s75_s28, %s74_s11  ;;  %s1052_s0 = sshll.u32 %s1485_s21, 6 }
  0x33   : > { %p77_p6 = scmp.eq.s32.totalorder %s76_s12, 0  ;;  %s191_s1 = sadd.s32 %s1052_s0, %s1051_s13 }
  0x34   : > { %s185_s23 = scalar_lea.vmem [#allocation9], %s1050_s10  ;;  %s1053_s20 = sshll.u32 %s191_s1, 7 }
  0x35   : > { %s194_s25 = sshll.u32 %s185_s23, 4  ;;  %s1927_s4 = sld [smem:[#allocation30_spill]]  ;;  %s195_s25 = int_to_ptr.vmem [resolvable:$true] %s194_s25 }
  0x36   : > { %s1660_s24 = scalar_select %p77_p6, %s1461_s15, %s79_s27  }
  0x37   : > { %p1669_p7 = pnand %p1154_p5, %p1636_p2  ;;  %s182_s11 = scalar_lea.sflag [#allocation10], %s1646_s9 }
  0x38   : > { %1926 = sst [smem:[#allocation28_spill]] %s1660_s24  ;;  %s1316_s12 = scalar_lea.vmem %s195_s25, 4096 }
  0x39   : > { %p1305_p8 = pneg %p1669_p7  ;;  %p1317_p9 = scmp.ne.s32.totalorder %s195_s25, %s1316_s12 }
  0x3a   : > { %s1509_s27 = smov [#allocation9]  }
  0x3b   : > { %s193_s5 = scalar_lea.hbm %s1927_s4, %s1053_s20  ;;  %p1319_p10 = pnand %p1317_p9, %p1305_p8 }
  0x3c   : > { %s1321_s2 = sshll.u32 %s1509_s27, 4  ;;  %s1322_s2 = int_to_ptr.vmem [resolvable:$false] %s1321_s2 }
  0x3d   : > { %p1320_p11 = pneg %p1319_p10  ;;  %s1323_s8 = scalar_lea.vmem %s1322_s2, 8192 }
  0x3e   : > { %p1324_p12 = scmp.lt.s32.totalorder %s195_s25, %s1322_s2  ;;  %p1325_p13 = scmp.lt.s32.totalorder %s1323_s8, %s1316_s12 }
  0x40   : > { %p1326_p0 = por %p1325_p13, %p1324_p12 }
  0x42   : > { %p1327_p1 = pnand %p1326_p0, %p1320_p11 }
  0x44   : > { %1330 = shalt.err (!%p1327_p1)
}
  0x45   : > { %s1510_s20 = smov 512   ;;  %s1511_s29 = smov 256  }
  0x46   : > { %s1512_s13 = smov 16   ;;  %s1055_s1 = sshll.u32 %s1477_s19, 5 }
  0x47   : > { %1150 = dma.hbm_to_vmem [thread:$0]  (!%p1669_p7), %s193_s5, 4096, %s195_s25, %s182_s11, %s1510_s20, %s1511_s29, %s1512_s13  }
  0x48   : > { %s220_s23 = scalar_lea.vmem [#allocation11], %s1050_s10  ;;  %s226_s12 = sadd.s32 %s1055_s1, %s1052_s0 }
  0x49   : > { %s229_s27 = sshll.u32 %s220_s23, 4  ;;  %s1057_s2 = sshll.u32 %s226_s12, 7  ;;  %s230_s27 = int_to_ptr.vmem [resolvable:$true] %s229_s27 }
  0x4a   : > { %s228_s26 = scalar_lea.hbm %s1906_s6, %s1057_s2  ;;  %s217_s24 = scalar_lea.sflag [#allocation12], %s1646_s9 }
  0x4b   : > { %s1344_s15 = scalar_lea.vmem %s230_s27, 4096  ;;  %s1513_s5 = smov [#allocation11]  }
  0x4c   : > { %p1345_p2 = scmp.ne.s32.totalorder %s230_s27, %s1344_s15  ;;  %s1349_s25 = sshll.u32 %s1513_s5, 4  ;;  %s1350_s25 = int_to_ptr.vmem [resolvable:$false] %s1349_s25 }
  0x4d   : > { %s1351_s10 = scalar_lea.vmem %s1350_s25, 8192  ;;  %p1352_p6 = scmp.lt.s32.totalorder %s230_s27, %s1350_s25 }
  0x4e   : > { %p1347_p4 = pnand %p1345_p2, %p1305_p8  ;;  %p1353_p9 = scmp.lt.s32.totalorder %s1351_s10, %s1344_s15 }
  0x50   : > { %p1348_p5 = pneg %p1347_p4  ;;  %p1354_p10 = por %p1353_p9, %p1352_p6 }
  0x52   : > { %p1355_p11 = pnand %p1354_p10, %p1348_p5 }
  0x54   : > { %1358 = shalt.err (!%p1355_p11)
}
  0x55   : > { %s1514_s0 = smov 128   ;;  %s1515_s4 = smov 8  }
  0x56   : > { %1153 = dma.hbm_to_vmem [thread:$0]  (!%p1669_p7), %s228_s26, 4096, %s230_s27, %s217_s24, %s1514_s0, %s1514_s0, %s1515_s4  }
  0x57   : > { %p1059_p12 = scmp.lt.s32.totalorder %s1489_s22, 1 }
  0x58   : > { %s247_s9 = sand.u32 (!%p1059_p12), 1, %s1457_s14  }
  0x59   : > { %245 = sbr.rel (%p1059_p12) target bundleno = 808 (0x328), region = 40  ;;  %s1060_s11 = sshll.u32 (!%p1059_p12), %s247_s9, 8 }
  0x5a   : > { %s248_s20 = scalar_lea.sflag (!%p1059_p12), [#allocation10], %s247_s9  ;;  %s1697_s29 = scalar_lea.vmem (!%p1059_p12), [#allocation9], %s1060_s11 }
  0x5e   : > { %1440 = dma.done.wait (%p1640_p3), %s248_s20, 4096  }
  0x5f   : > { %1442 = vsyncadd (%p1640_p3), %s248_s20, 4294963200  ;;  %s257_s15 = scalar_lea.sflag [#allocation12], %s247_s9  ;;  %s1703_s13 = scalar_lea.vmem [#allocation11], %s1060_s11 }
  0x60   : > { %1444 = dma.done.wait (%p1640_p3), %s257_s15, 4096  }
  0x61   : > { %1446 = vsyncadd (%p1640_p3), %s257_s15, 4294963200  ;;  %s1710_s24 = sshll.u32 %s1469_s17, 6  ;;  %s1062_s26 = sshll.u32 %s1469_s17, 3 }
  0x62   : > { %s330_s28 = sld [smem:[#allocation8 + %s1473_s18]]  ;;  %p306_p7 = scmp.lt.s32.totalorder %s1473_s18, 3 }
  0x63   : > { %p308_p8 = scmp.lt.s32.totalorder %s1062_s26, 15  ;;  %s1065_s1 = sshll.u32 %s1465_s16, 1 }
  0x64   : > { %s1717_s23 = scalar_select %p306_p7, %s1473_s18, 3 }
  0x65   : > { %s1956_s26 = smov (!%p308_p8, %s1062_s26), 15  ;;  %p319_p3 = scmp.lt.s32.totalorder %s1065_s1, 3 }
  0x66   : > { %s1063_s30 = sshll.u32 %s1717_s23, 4  ;;  %s1066_s12 = sshll.u32 %s1717_s23, 2 }
  0x67   : > { %s311_s27 = sadd.s32 %s1063_s30, %s1956_s26  ;;  %s328_s4 = scalar_lea.vmem %s1907_s7, %s1717_s23 }
  0x68   : > { %s331_s2 = ssub.s32 %s330_s28, %s1710_s24  ;;  %s1064_s8 = sshll.u32 %s311_s27, 3 }
  0x69   : > { %p332_p13 = scmp.gt.s32.totalorder %s331_s2, 0  ;;  %p1068_p0 = scmp.lt.s32.totalorder %s331_s2, 64 }
  0x6a   : > { %s1725_s25 = scalar_lea.vmem %s1903_s3, %s1064_s8  ;;  %s1960_s1 = smov (!%p319_p3, %s1065_s1), 3 }
  0x6b   : > { %s1958_s2 = smov (!%p332_p13, %s331_s2), 0  ;;  %s1733_s9 = sadd.s32 %s1066_s12, %s1960_s1 }
  0x6c   : > { %s1962_s2 = smov (!%p1068_p0, %s1958_s2), 64  ;;  %s1929_s15 = sld [smem:[#allocation31_spill]] }
  0x6d   : > { %p1073_p1 = scmp.ne.s32.totalorder %s1465_s16, 0 }
  0x6e   : > { %p1074_p2 = scmp.le.s32.totalorder (!%p1073_p1), %s1962_s2, 0 }
  0x6f   : > { %339 = sbr.rel (%p1073_p1) target bundleno = 160 (0xa0), region = 52 }
  0x72   : > { %s323_s26 = scalar_lea.vmem %s1929_s15, %s1733_s9 }
  0x74   : > { %969 = sbr.rel (%p1074_p2) target bundleno = 141 (0x8d), region = 167  ;;  %s1491_s28 = smov (!%p1074_p2), 0  }
  0x79 LB: >> { %s1075_s1 = sshll.u32 %s1473_s18, 7  ;;  %s1930_s17 = sld [smem:[#allocation29_spill]]  ;;  %s1493_s28 = sphi %s1491_s28, %s343_s28  }
  0x7a   : >> { %s347_s30 = sadd.s32 %s1075_s1, %s1710_s24  ;;  %s351_s0 = scalar_lea.vmem [#allocation2], %s1493_s28 }
  0x7b   : >> { %s348_s27 = sadd.s32 %s1493_s28, %s347_s30 }
  0x7c   : >> { %s349_s12 = sld [smem:[#allocation7 + %s348_s27]] }
  0x82   : >> { %s350_s10 = scalar_lea.vmem %s1930_s17, %s349_s12 }
  0x83   : >> { %v370_v0 = vld [vmem:[%s350_s10] sm:$0x1] }
  0x84   : >> { %371 = vst [vmem:[%s351_s0] sm:$0x1] %v370_v0 }
  0x85   : >> { %397 = vsyncadd [#allocation5], 16  ;;  %s343_s28 = sadd.s32 1, %s1493_s28  }
  0x86   : >> { %p342_p4 = scmp.ge.s32.totalorder %s343_s28, %s1962_s2 }
  0x88   : > { %345 = sbr.rel (!%p342_p4) target bundleno = 121 (0x79), region = 173 }
  0x8d PF: > { %974 = sbr.rel (%p1074_p2) target bundleno = 155 (0x9b), region = 178  ;;  %s1495_s11 = smov (!%p1074_p2), 0  }
  0x92 LB: >> { %1447 = dma.done.wait [#allocation5], 16  ;;  %s1497_s11 = sphi %s1495_s11, %s401_s11  }
  0x93   : >> { %1448 = vsyncadd [#allocation5], 4294967280  ;;  %s401_s11 = sadd.s32 1, %s1497_s11  }
  0x94   : >> { %p400_p5 = scmp.ge.s32.totalorder %s401_s11, %s1962_s2 }
  0x96   : > { %403 = sbr.rel (!%p400_p5) target bundleno = 146 (0x92), region = 184 }
  0x9b PF: > { %v1516_v1 = vmov 0.0  }
  0x9c   : > { %406 = vst [vmem:[#allocation4 + $0x30] sm:$0xff] %v1516_v1  ;;  %407 = vst [vmem:[#allocation4] sm:$0xff] %v1516_v1 }
  0x9d   : > { %408 = vst [vmem:[#allocation4 + $0x18] sm:$0xff] %v1516_v1  ;;  %409 = vst [vmem:[#allocation4 + $0x10] sm:$0xff] %v1516_v1 }
  0x9e   : > { %410 = vst [vmem:[#allocation4 + $0x8] sm:$0xff] %v1516_v1  ;;  %411 = vst [vmem:[#allocation4 + $0x20] sm:$0xff] %v1516_v1 }
  0x9f   : > { %412 = vst [vmem:[#allocation4 + $0x28] sm:$0xff] %v1516_v1  ;;  %413 = vst [vmem:[#allocation4 + $0x38] sm:$0xff] %v1516_v1 }
  0xa0 PF: > { %v453_v2 = vld [vmem:[%s1697_s29 + $0xf8] sm:$0xff]  ;;  %v452_v3 = vld [vmem:[%s1697_s29 + $0xf0] sm:$0xff]  ;;  %v451_v4 = vld [vmem:[%s1697_s29 + $0xe8] sm:$0xff]  ;;  %v1517_v6 = vmov 0.0   ;;  %p1077_p6 = scmp.ne.s32.totalorder %s1465_s16, 1 }
  0xa1   : > { %466 = vmatprep.subr.mxu0 %v453_v2  ;;  %v450_v5 = vld [vmem:[%s1697_s29 + $0xe0] sm:$0xff]  ;;  %530 = vmatprep.mubr.f32.mxu0 %v1517_v6  ;;  %v449_v7 = vld [vmem:[%s1697_s29 + $0xd8] sm:$0xff]  ;;  %v448_v8 = vld [vmem:[%s1697_s29 + $0xd0] sm:$0xff]  ;;  %p1079_p9 = scmp.le.s32.totalorder (!%p1077_p6), %s1962_s2, 0 }
  0xa2   : > { %467 = vmatpush1.msra.mxu0 %v452_v3  ;;  %v447_v9 = vld [vmem:[%s1697_s29 + $0xc8] sm:$0xff]  ;;  %v446_v10 = vld [vmem:[%s1697_s29 + $0xc0] sm:$0xff]  ;;  %v445_v11 = vld [vmem:[%s1697_s29 + $0xb8] sm:$0xff] }
  0xa3   : > { %468 = vmatprep.subr.mxu0 %v451_v4  ;;  %v444_v12 = vld [vmem:[%s1697_s29 + $0xb0] sm:$0xff]  ;;  %v443_v13 = vld [vmem:[%s1697_s29 + $0xa8] sm:$0xff]  ;;  %v442_v14 = vld [vmem:[%s1697_s29 + $0xa0] sm:$0xff] }
  0xa4   : > { %469 = vmatpush1.msra.mxu0 %v450_v5  ;;  %v441_v15 = vld [vmem:[%s1697_s29 + $0x98] sm:$0xff]  ;;  %v440_v16 = vld [vmem:[%s1697_s29 + $0x90] sm:$0xff]  ;;  %v439_v17 = vld [vmem:[%s1697_s29 + $0x88] sm:$0xff] }
  0xa5   : > { %470 = vmatprep.subr.mxu0 %v449_v7  ;;  %v438_v18 = vld [vmem:[%s1697_s29 + $0x80] sm:$0xff]  ;;  %v634_v19 = vld [vmem:[%s1703_s13 + $0xf8] sm:$0xff]  ;;  %v633_v22 = vld [vmem:[%s1703_s13 + $0xf0] sm:$0xff] }
  0xa6   : > { %471 = vmatpush1.msra.mxu0 %v448_v8  ;;  %v618_v20 = vld [vmem:[%s1703_s13 + $0x78] sm:$0xff]  ;;  %1087 = vmatprep.subr.mxu1 %v634_v19  ;;  %v617_v23 = vld [vmem:[%s1703_s13 + $0x70] sm:$0xff]  ;;  %v632_v25 = vld [vmem:[%s1703_s13 + $0xe8] sm:$0xff] }
  0xa7   : > { %472 = vmatprep.subr.mxu0 %v447_v9  ;;  %v437_v21 = vld [vmem:[%s1697_s29 + $0x78] sm:$0xff]  ;;  %v436_v24 = vld [vmem:[%s1697_s29 + $0x70] sm:$0xff]  ;;  %1088 = vmatpush3.msra.mxu1 %v618_v20  ;;  %v435_v26 = vld [vmem:[%s1697_s29 + $0x68] sm:$0xff] }
  0xa8   : > { %473 = vmatpush1.msra.mxu0 %v446_v10  ;;  %1089 = vmatprep.subr.mxu1 %v633_v22  ;;  %v616_v27 = vld [vmem:[%s1703_s13 + $0x68] sm:$0xff]  ;;  %v434_v28 = vld [vmem:[%s1697_s29 + $0x60] sm:$0xff]  ;;  %v433_v30 = vld [vmem:[%s1697_s29 + $0x58] sm:$0xff] }
  0xa9   : > { %474 = vmatprep.subr.mxu0 %v445_v11  ;;  %1090 = vmatpush3.msra.mxu1 %v617_v23  ;;  %v631_v29 = vld [vmem:[%s1703_s13 + $0xe0] sm:$0xff]  ;;  %v432_v32 = vld [vmem:[%s1697_s29 + $0x50] sm:$0xff]  ;;  %v630_v33 = vld [vmem:[%s1703_s13 + $0xd8] sm:$0xff] }
  0xaa   : > { %475 = vmatpush1.msra.mxu0 %v444_v12  ;;  %1091 = vmatprep.subr.mxu1 %v632_v25  ;;  %v615_v31 = vld [vmem:[%s1703_s13 + $0x60] sm:$0xff]  ;;  %v431_v34 = vld [vmem:[%s1697_s29 + $0x48] sm:$0xff]  ;;  %v614_v35 = vld [vmem:[%s1703_s13 + $0x58] sm:$0xff] }
  0xab   : > { %476 = vmatprep.subr.mxu0 %v443_v13  ;;  %1092 = vmatpush3.msra.mxu1 %v616_v27  ;;  %v430_v36 = vld [vmem:[%s1697_s29 + $0x40] sm:$0xff]  ;;  %v629_v37 = vld [vmem:[%s1703_s13 + $0xd0] sm:$0xff]  ;;  %v429_v38 = vld [vmem:[%s1697_s29 + $0x38] sm:$0xff] }
  0xac   : > { %477 = vmatpush1.msra.mxu0 %v442_v14  ;;  %1093 = vmatprep.subr.mxu1 %v631_v29  ;;  %v613_v39 = vld [vmem:[%s1703_s13 + $0x50] sm:$0xff]  ;;  %v628_v41 = vld [vmem:[%s1703_s13 + $0xc8] sm:$0xff]  ;;  %v426_v44 = vld [vmem:[%s1697_s29 + $0x20] sm:$0xff] }
  0xad   : > { %478 = vmatprep.subr.mxu0 %v441_v15  ;;  %1094 = vmatpush3.msra.mxu1 %v615_v31  ;;  %v428_v40 = vld [vmem:[%s1697_s29 + $0x30] sm:$0xff]  ;;  %v427_v42 = vld [vmem:[%s1697_s29 + $0x28] sm:$0xff]  ;;  %v627_v45 = vld [vmem:[%s1703_s13 + $0xc0] sm:$0xff] }
  0xae   : > { %479 = vmatpush1.msra.mxu0 %v440_v16  ;;  %1095 = vmatprep.subr.mxu1 %v630_v33  ;;  %v612_v43 = vld [vmem:[%s1703_s13 + $0x48] sm:$0xff]  ;;  %v425_v46 = vld [vmem:[%s1697_s29 + $0x18] sm:$0xff]  ;;  %v611_v47 = vld [vmem:[%s1703_s13 + $0x40] sm:$0xff] }
  0xaf   : > { %480 = vmatprep.subr.mxu0 %v439_v17  ;;  %1096 = vmatpush3.msra.mxu1 %v614_v35  ;;  %v424_v48 = vld [vmem:[%s1697_s29 + $0x10] sm:$0xff]  ;;  %v626_v49 = vld [vmem:[%s1703_s13 + $0xb8] sm:$0xff]  ;;  %v423_v50 = vld [vmem:[%s1697_s29 + $0x8] sm:$0xff] }
  0xb0   : > { %481 = vmatpush1.msra.mxu0 %v438_v18  ;;  %1097 = vmatprep.subr.mxu1 %v629_v37  ;;  %v610_v51 = vld [vmem:[%s1703_s13 + $0x38] sm:$0xff]  ;;  %v422_v52 = vld [vmem:[%s1697_s29] sm:$0xff]  ;;  %v625_v53 = vld [vmem:[%s1703_s13 + $0xb0] sm:$0xff] }
  0xb1   : > { %482 = vmatprep.subr.mxu0 %v437_v21  ;;  %1098 = vmatpush3.msra.mxu1 %v613_v39  ;;  %v414_v54 = vld [vmem:[#allocation2] sm:$0xff]  ;;  %v609_v55 = vld [vmem:[%s1703_s13 + $0x30] sm:$0xff]  ;;  %v624_v56 = vld [vmem:[%s1703_s13 + $0xa8] sm:$0xff] }
  0xb2   : > { %483 = vmatpush1.msra.mxu0 %v436_v24  ;;  %1099 = vmatprep.subr.mxu1 %v628_v41  ;;  %v608_v57 = vld [vmem:[%s1703_s13 + $0x28] sm:$0xff]  ;;  %v623_v58 = vld [vmem:[%s1703_s13 + $0xa0] sm:$0xff]  ;;  %v416_v61 = vld [vmem:[#allocation2 + $0x10] sm:$0xff] }
  0xb3   : > { %484 = vmatprep.subr.mxu0 %v435_v26  ;;  %1100 = vmatpush3.msra.mxu1 %v612_v43  ;;  %v415_v59 = vld [vmem:[#allocation2 + $0x8] sm:$0xff]  ;;  %v607_v60 = vld [vmem:[%s1703_s13 + $0x20] sm:$0xff]  ;;  %v417_v62 = vld [vmem:[#allocation2 + $0x18] sm:$0xff] }
  0xb4   : > { %485 = vmatpush1.msra.mxu0 %v434_v28  ;;  %1101 = vmatprep.subr.mxu1 %v627_v45  ;;  %v418_v63 = vld [vmem:[#allocation2 + $0x20] sm:$0xff]  ;;  %v419_v0 = vld [vmem:[#allocation2 + $0x28] sm:$0xff]  ;;  %v420_v1 = vld [vmem:[#allocation2 + $0x30] sm:$0xff] }
  0xb5   : > { %486 = vmatprep.subr.mxu0 %v433_v30  ;;  %1102 = vmatpush3.msra.mxu1 %v611_v47  ;;  %v421_v2 = vld [vmem:[#allocation2 + $0x38] sm:$0xff]  ;;  %v621_v5 = vld [vmem:[%s1703_s13 + $0x90] sm:$0xff]  ;;  %v620_v8 = vld [vmem:[%s1703_s13 + $0x88] sm:$0xff] }
  0xb6   : > { %487 = vmatpush1.msra.mxu0 %v432_v32  ;;  %1103 = vmatprep.subr.mxu1 %v626_v49  ;;  %v622_v3 = vld [vmem:[%s1703_s13 + $0x98] sm:$0xff]  ;;  %v605_v7 = vld [vmem:[%s1703_s13 + $0x10] sm:$0xff]  ;;  %v604_v9 = vld [vmem:[%s1703_s13 + $0x8] sm:$0xff] }
  0xb7   : > { %488 = vmatprep.subr.mxu0 %v431_v34  ;;  %1104 = vmatpush3.msra.mxu1 %v610_v51  ;;  %v606_v4 = vld [vmem:[%s1703_s13 + $0x18] sm:$0xff]  ;;  %v619_v10 = vld [vmem:[%s1703_s13 + $0x80] sm:$0xff] }
  0xb8   : > { %489 = vmatpush1.msra.mxu0 %v430_v36  ;;  %1105 = vmatprep.subr.mxu1 %v625_v53  ;;  %v603_v11 = vld [vmem:[%s1703_s13] sm:$0xff] }
  0xb9   : > { %490 = vmatprep.subr.mxu0 %v429_v38  ;;  %1106 = vmatpush3.msra.mxu1 %v609_v55  ;;  %v454_v14 = vld [vmem:[%s323_s26] sm:$0x3] }
  0xba   : > { %491 = vmatpush1.msra.mxu0 %v428_v40  ;;  %1107 = vmatprep.subr.mxu1 %v624_v56 }
  0xbb   : > { %492 = vmatprep.subr.mxu0 %v427_v42  ;;  %1108 = vmatpush3.msra.mxu1 %v608_v57 }
  0xbc   : > { %493 = vmatpush1.msra.mxu0 %v426_v44  ;;  %1109 = vmatprep.subr.mxu1 %v623_v58 }
  0xbd   : > { %494 = vmatprep.subr.mxu0 %v425_v46  ;;  %1110 = vmatpush3.msra.mxu1 %v607_v60 }
  0xbe   : > { %495 = vmatpush1.msra.mxu0 %v424_v48  ;;  %1111 = vmatprep.subr.mxu1 %v622_v3  ;;  %v595_v3 = vld [vmem:[#allocation4 + $0x30] sm:$0xff] }
  0xbf   : > { %496 = vmatprep.subr.mxu0 %v423_v50  ;;  %1112 = vmatpush3.msra.mxu1 %v606_v4 }
  0xc0   : > { %497 = vmatpush1.msra.mxu0 %v422_v52  ;;  %1113 = vmatprep.subr.mxu1 %v621_v5 }
  0xc1   : > { %531 = vmatmul.mubr.f32.vlgmr.msra.gmra.mxu0 %v414_v54  ;;  %1114 = vmatpush3.msra.mxu1 %v605_v7 }
  0xc2   : > { %536 = vmatprep.mubr.f32.mxu0 %v1517_v6  ;;  %1115 = vmatprep.subr.mxu1 %v620_v8 }
  0xc3   : > { %1116 = vmatpush3.msra.mxu1 %v604_v9  ;;  %v596_v9 = vld [vmem:[#allocation4] sm:$0xff] }
  0xc4   : > { %1117 = vmatprep.subr.mxu1 %v619_v10 }
  0xc5   : > { %537 = vmatmul.mubr.f32.gmra.mxu0 %v415_v59  ;;  %1118 = vmatpush3.msra.mxu1 %v603_v11 }
  0xc6   : > { %542 = vmatprep.mubr.f32.mxu0 %v1517_v6 }
  0xc9   : > { %543 = vmatmul.mubr.f32.gmra.mxu0 %v416_v61 }
  0xca   : > { %548 = vmatprep.mubr.f32.mxu0 %v1517_v6 }
  0xcd   : > { %549 = vmatmul.mubr.f32.gmra.mxu0 %v417_v62 }
  0xce   : > { %554 = vmatprep.mubr.f32.mxu0 %v1517_v6 }
  0xd1   : > { %555 = vmatmul.mubr.f32.gmra.mxu0 %v418_v63 }
  0xd2   : > { %560 = vmatprep.mubr.f32.mxu0 %v1517_v6 }
  0xd5   : > { %561 = vmatmul.mubr.f32.gmra.mxu0 %v419_v0 }
  0xd6   : > { %566 = vmatprep.mubr.f32.mxu0 %v1517_v6 }
  0xd9   : > { %567 = vmatmul.mubr.f32.gmra.mxu0 %v420_v1 }
  0xda   : > { %572 = vmatprep.mubr.f32.mxu0 %v1517_v6  ;;  %v456_v6 = vlaneseq }
  0xdc   : > { %v457_v12 = vshrl.u32 %v456_v6, 7 }
  0xdd   : > { %573 = vmatmul.mubr.f32.gmra.mxu0 %v421_v2 }
  0xde   : > { %v458_v13 = vsub.s32 0, %v457_v12  ;;  %v462_v15 = vsub.s32 1, %v457_v12 }
  0xe0   : > { %v459_v16 = vrot.slane %v454_v14, %v458_v13  ;;  %v463_v17 = vrot.slane %v454_v14, %v462_v15  ;;  %v597_v13 = vld [vmem:[#allocation4 + $0x18] sm:$0xff] }
 0x181   : > { %v532_v18 = vpop.f32.mrf.mxu0 }
 0x182   : > { %v533_v19 = vadd.f32 %v532_v18, %v459_v16  ;;  %v598_v18 = vld [vmem:[#allocation4 + $0x10] sm:$0xff] }
 0x183   : > { %v534_v20 = vpop.f32.mrf.mxu0 }
 0x184   : > { %v535_v21 = vadd.f32 %v534_v20, %v463_v17  ;;  %v579_v24 = vmax.f32 %v533_v19, 0.0 }
 0x185   : > { %v538_v22 = vpop.f32.mrf.mxu0 }
 0x186   : > { %v580_v23 = vmax.f32 %v535_v21, 0.0  ;;  %v539_v25 = vadd.f32 %v538_v22, %v459_v16 }
 0x187   : > { %v540_v26 = vpop.f32.mrf.mxu0 }
 0x188   : > { %v541_v27 = vadd.f32 %v540_v26, %v463_v17  ;;  %699 = vmatprep.mubr.f32.mxu1 %v580_v23  ;;  %v581_v30 = vmax.f32 %v539_v25, 0.0  ;;  %v599_v23 = vld [vmem:[#allocation4 + $0x8] sm:$0xff] }
 0x189   : > { %v544_v28 = vpop.f32.mrf.mxu0  ;;  %700 = vmatmul.mubr.f32.vlgmr.msra.gmra.mxu1 %v579_v24 }
 0x18a   : > { %v582_v29 = vmax.f32 %v541_v27, 0.0  ;;  %v545_v31 = vadd.f32 %v544_v28, %v459_v16  ;;  %v600_v28 = vld [vmem:[#allocation4 + $0x20] sm:$0xff] }
 0x18b   : > { %v546_v32 = vpop.f32.mrf.mxu0 }
 0x18c   : > { %v547_v33 = vadd.f32 %v546_v32, %v463_v17  ;;  %704 = vmatprep.mubr.f32.mxu1 %v582_v29  ;;  %v583_v36 = vmax.f32 %v545_v31, 0.0 }
 0x18d   : > { %v550_v34 = vpop.f32.mrf.mxu0  ;;  %705 = vmatmul.mubr.f32.gmra.mxu1 %v581_v30 }
 0x18e   : > { %v584_v35 = vmax.f32 %v547_v33, 0.0  ;;  %v551_v37 = vadd.f32 %v550_v34, %v459_v16  ;;  %v601_v33 = vld [vmem:[#allocation4 + $0x28] sm:$0xff] }
 0x18f   : > { %v552_v38 = vpop.f32.mrf.mxu0 }
 0x190   : > { %v553_v39 = vadd.f32 %v552_v38, %v463_v17  ;;  %709 = vmatprep.mubr.f32.mxu1 %v584_v35  ;;  %v585_v42 = vmax.f32 %v551_v37, 0.0  ;;  %v602_v38 = vld [vmem:[#allocation4 + $0x38] sm:$0xff] }
 0x191   : > { %v556_v40 = vpop.f32.mrf.mxu0  ;;  %710 = vmatmul.mubr.f32.gmra.mxu1 %v583_v36 }
 0x192   : > { %v586_v41 = vmax.f32 %v553_v39, 0.0  ;;  %v557_v43 = vadd.f32 %v556_v40, %v459_v16 }
 0x193   : > { %v558_v44 = vpop.f32.mrf.mxu0 }
 0x194   : > { %v559_v45 = vadd.f32 %v558_v44, %v463_v17  ;;  %714 = vmatprep.mubr.f32.mxu1 %v586_v41  ;;  %v587_v48 = vmax.f32 %v557_v43, 0.0 }
 0x195   : > { %v562_v46 = vpop.f32.mrf.mxu0  ;;  %715 = vmatmul.mubr.f32.gmra.mxu1 %v585_v42 }
 0x196   : > { %v588_v47 = vmax.f32 %v559_v45, 0.0  ;;  %v563_v49 = vadd.f32 %v562_v46, %v459_v16 }
 0x197   : > { %v564_v50 = vpop.f32.mrf.mxu0 }
 0x198   : > { %v565_v51 = vadd.f32 %v564_v50, %v463_v17  ;;  %719 = vmatprep.mubr.f32.mxu1 %v588_v47  ;;  %v589_v54 = vmax.f32 %v563_v49, 0.0 }
 0x199   : > { %v568_v52 = vpop.f32.mrf.mxu0  ;;  %720 = vmatmul.mubr.f32.gmra.mxu1 %v587_v48 }
 0x19a   : > { %v590_v53 = vmax.f32 %v565_v51, 0.0  ;;  %v569_v55 = vadd.f32 %v568_v52, %v459_v16 }
 0x19b   : > { %v570_v56 = vpop.f32.mrf.mxu0 }
 0x19c   : > { %v571_v57 = vadd.f32 %v570_v56, %v463_v17  ;;  %724 = vmatprep.mubr.f32.mxu1 %v590_v53  ;;  %v591_v60 = vmax.f32 %v569_v55, 0.0 }
 0x19d   : > { %v574_v58 = vpop.f32.mrf.mxu0  ;;  %725 = vmatmul.mubr.f32.gmra.mxu1 %v589_v54 }
 0x19e   : > { %v592_v59 = vmax.f32 %v571_v57, 0.0  ;;  %v575_v61 = vadd.f32 %v574_v58, %v459_v16 }
 0x19f   : > { %v576_v62 = vpop.f32.mrf.mxu0 }
 0x1a0   : > { %v577_v63 = vadd.f32 %v576_v62, %v463_v17  ;;  %729 = vmatprep.mubr.f32.mxu1 %v592_v59  ;;  %v593_v1 = vmax.f32 %v575_v61, 0.0 }
 0x1a1   : > { %730 = vmatmul.mubr.f32.gmra.mxu1 %v591_v60 }
 0x1a2   : > { %v594_v0 = vmax.f32 %v577_v63, 0.0 }
 0x1a4   : > { %734 = vmatprep.mubr.f32.mxu1 %v594_v0 }
 0x1a5   : > { %735 = vmatmul.mubr.f32.gmra.mxu1 %v593_v1 }
 0x249   : > { %v1119_v2 = vpop.f32.mrf.mxu1 }
 0x24b   : > { %v1120_v4 = vpop.f32.mrf.mxu1 }
 0x24c   : > { %v1121_v5 = vadd.f32 %v1120_v4, %v1119_v2 }
 0x24d   : > { %v1122_v7 = vpop.f32.mrf.mxu1 }
 0x24e   : > { %v740_v8 = vadd.f32 %v1121_v5, %v595_v3 }
 0x24f   : > { %v1123_v10 = vpop.f32.mrf.mxu1 }
 0x250   : > { %748 = vst [vmem:[#allocation4 + $0x30] sm:$0xff] %v740_v8  ;;  %v1124_v11 = vadd.f32 %v1123_v10, %v1122_v7 }
 0x251   : > { %v1125_v6 = vpop.f32.mrf.mxu1 }
 0x252   : > { %v741_v12 = vadd.f32 %v1124_v11, %v596_v9 }
 0x253   : > { %v1126_v14 = vpop.f32.mrf.mxu1 }
 0x254   : > { %749 = vst [vmem:[#allocation4] sm:$0xff] %v741_v12  ;;  %v1127_v15 = vadd.f32 %v1126_v14, %v1125_v6 }
 0x255   : > { %v1128_v16 = vpop.f32.mrf.mxu1 }
 0x256   : > { %v742_v17 = vadd.f32 %v1127_v15, %v597_v13 }
 0x257   : > { %v1129_v19 = vpop.f32.mrf.mxu1 }
 0x258   : > { %750 = vst [vmem:[#allocation4 + $0x18] sm:$0xff] %v742_v17  ;;  %v1130_v20 = vadd.f32 %v1129_v19, %v1128_v16 }
 0x259   : > { %v1131_v21 = vpop.f32.mrf.mxu1 }
 0x25a   : > { %v743_v22 = vadd.f32 %v1130_v20, %v598_v18 }
 0x25b   : > { %v1132_v24 = vpop.f32.mrf.mxu1 }
 0x25c   : > { %751 = vst [vmem:[#allocation4 + $0x10] sm:$0xff] %v743_v22  ;;  %v1133_v25 = vadd.f32 %v1132_v24, %v1131_v21 }
 0x25d   : > { %v1134_v26 = vpop.f32.mrf.mxu1 }
 0x25e   : > { %v744_v27 = vadd.f32 %v1133_v25, %v599_v23 }
 0x25f   : > { %v1135_v29 = vpop.f32.mrf.mxu1 }
 0x260   : > { %752 = vst [vmem:[#allocation4 + $0x8] sm:$0xff] %v744_v27  ;;  %v1136_v30 = vadd.f32 %v1135_v29, %v1134_v26 }
 0x261   : > { %v1137_v31 = vpop.f32.mrf.mxu1 }
 0x262   : > { %v745_v32 = vadd.f32 %v1136_v30, %v600_v28 }
 0x263   : > { %v1138_v34 = vpop.f32.mrf.mxu1 }
 0x264   : > { %753 = vst [vmem:[#allocation4 + $0x20] sm:$0xff] %v745_v32  ;;  %v1139_v35 = vadd.f32 %v1138_v34, %v1137_v31 }
 0x265   : > { %v1140_v36 = vpop.f32.mrf.mxu1 }
 0x266   : > { %v746_v37 = vadd.f32 %v1139_v35, %v601_v33 }
 0x267   : > { %v1141_v39 = vpop.f32.mrf.mxu1 }
 0x268   : > { %754 = vst [vmem:[#allocation4 + $0x28] sm:$0xff] %v746_v37  ;;  %v1142_v40 = vadd.f32 %v1141_v39, %v1140_v36  ;;  %759 = sbr.rel (%p1077_p6) target bundleno = 808 (0x328), region = 100 }
 0x26a   : > { %v747_v41 = vadd.f32 %v1142_v40, %v602_v38 }
 0x26c   : > { %755 = vst [vmem:[#allocation4 + $0x38] sm:$0xff] %v747_v41 }
 0x26d   : > { %v785_v42 = vld [vmem:[%s1725_s25 + $0x10] sm:$0xff]  ;;  %v783_v43 = vld [vmem:[%s1725_s25] sm:$0xff]  ;;  %v1518_v44 = vmov 0   ;;  %v786_v45 = vld [vmem:[%s1725_s25 + $0x18] sm:$0xff]  ;;  %s1846_s23 = smov (!%p1079_p9), 0  }
 0x26e   : > { %1278 = vset.pattern.permute.xlu1 %v1518_v44  ;;  %1277 = vset.pattern.permute.xlu0 %v1518_v44  ;;  %v784_v46 = vld [vmem:[%s1725_s25 + $0x8] sm:$0xff]  ;;  %v787_v48 = vld [vmem:[%s1725_s25 + $0x20] sm:$0xff]  ;;  %v790_v49 = vld [vmem:[%s1725_s25 + $0x38] sm:$0xff] }
 0x26f   : > { %803 = vperm.xlu1 %1278, %v785_v42   ;;  %793 = vperm.xlu0 %1277, %v783_v43   ;;  %v788_v47 = vld [vmem:[%s1725_s25 + $0x28] sm:$0xff]  ;;  %v789_v50 = vld [vmem:[%s1725_s25 + $0x30] sm:$0xff]  ;;  %v762_v51 = vld [vmem:[#allocation4 + $0x18] sm:$0xff] }
 0x270   : > { %v1078_v52 = vld [vmem:[%s328_s4] ss:$0 sm:$0xff]  ;;  %v760_v53 = vld [vmem:[#allocation4 + $0x30] sm:$0xff]  ;;  %v764_v1 = vld [vmem:[#allocation4 + $0x8] sm:$0xff] }
 0x271   : > { %v777_v54 = vadd.f32 %v1078_v52, %v762_v51  ;;  %v775_v55 = vadd.f32 %v1078_v52, %v760_v53  ;;  %v763_v56 = vld [vmem:[#allocation4 + $0x10] sm:$0xff]  ;;  %v761_v57 = vld [vmem:[#allocation4] sm:$0xff]  ;;  %v779_v8 = vadd.f32 %v1078_v52, %v764_v1  ;;  %v766_v10 = vld [vmem:[#allocation4 + $0x28] sm:$0xff] }
 0x272   : > { %v778_v62 = vadd.f32 %v1078_v52, %v763_v56  ;;  %v776_v63 = vadd.f32 %v1078_v52, %v761_v57  ;;  %v765_v0 = vld [vmem:[#allocation4 + $0x20] sm:$0xff]  ;;  %v781_v15 = vadd.f32 %v1078_v52, %v766_v10 }
 0x273   : > { %808 = vperm.xlu1 %1278, %v786_v45   ;;  %798 = vperm.xlu0 %1277, %v784_v46   ;;  %v780_v7 = vadd.f32 %v1078_v52, %v765_v0  ;;  %v767_v9 = vld [vmem:[#allocation4 + $0x38] sm:$0xff] }
 0x274   : > { %v782_v14 = vadd.f32 %v1078_v52, %v767_v9 }
 0x277   : > { %818 = vperm.xlu1 %1278, %v788_v47   ;;  %813 = vperm.xlu0 %1277, %v787_v48  }
 0x27b   : > { %828 = vperm.xlu1 %1278, %v790_v49   ;;  %823 = vperm.xlu0 %1277, %v789_v50  }
 0x2ea   : > { %v804_v58 = vpop.permute.xlu1 %803  ;;  %v794_v59 = vpop.permute.xlu0 %793 }
 0x2eb   : > { %v833_v60 = vmul.f32 %v804_v58, %v777_v54  ;;  %v831_v61 = vmul.f32 %v794_v59, %v775_v55 }
 0x2ed   : > { %841 = vst [vmem:[#allocation3 + $0x10] sm:$0xff] %v833_v60  ;;  %839 = vst [vmem:[#allocation3] sm:$0xff] %v831_v61 }
 0x2ee   : > { %v809_v2 = vpop.permute.xlu1 %808  ;;  %v799_v3 = vpop.permute.xlu0 %798 }
 0x2ef   : > { %v834_v4 = vmul.f32 %v809_v2, %v778_v62  ;;  %v832_v5 = vmul.f32 %v799_v3, %v776_v63 }
 0x2f1   : > { %842 = vst [vmem:[#allocation3 + $0x18] sm:$0xff] %v834_v4  ;;  %840 = vst [vmem:[#allocation3 + $0x8] sm:$0xff] %v832_v5 }
 0x2f2   : > { %v819_v11 = vpop.permute.xlu1 %818  ;;  %v814_v6 = vpop.permute.xlu0 %813 }
 0x2f3   : > { %v836_v12 = vmul.f32 %v819_v11, %v780_v7  ;;  %v835_v13 = vmul.f32 %v814_v6, %v779_v8 }
 0x2f5   : > { %844 = vst [vmem:[#allocation3 + $0x28] sm:$0xff] %v836_v12  ;;  %843 = vst [vmem:[#allocation3 + $0x20] sm:$0xff] %v835_v13  ;;  %979 = sbr.rel (%p1079_p9) target bundleno = 794 (0x31a), region = 189 }
 0x2f6   : > { %v829_v16 = vpop.permute.xlu1 %828  ;;  %v824_v17 = vpop.permute.xlu0 %823 }
 0x2f7   : > { %v838_v18 = vmul.f32 %v829_v16, %v782_v14  ;;  %v837_v19 = vmul.f32 %v824_v17, %v781_v15 }
 0x2f9   : > { %846 = vst [vmem:[#allocation3 + $0x38] sm:$0xff] %v838_v18  ;;  %845 = vst [vmem:[#allocation3 + $0x30] sm:$0xff] %v837_v19 }
 0x2fa LB: >> { %s1080_s25 = sshll.u32 %s1473_s18, 7  ;;  %s857_s28 = scalar_lea.vmem [#allocation3], %s1501_s23  ;;  %s1501_s23 = sphi %s1846_s23, %s850_s23  }
 0x2fb   : >> { %s854_s4 = sadd.s32 %s1080_s25, %s1710_s24  ;;  %s868_s1 = sshll.u32 %s857_s28, 4  ;;  %s869_s1 = int_to_ptr.vmem [resolvable:$true] %s868_s1 }
 0x2fc   : >> { %s855_s9 = sadd.s32 %s1501_s23, %s854_s4  ;;  %s1932_s8 = sld [smem:[#allocation32_spill]] }
 0x2fd   : >> { %s856_s26 = sld [smem:[#allocation7 + %s855_s9]]  ;;  %s1359_s17 = scalar_lea.vmem %s869_s1, 16 }
 0x2fe   : >> { %p1360_p10 = scmp.ne.s32.totalorder %s869_s1, %s1359_s17  ;;  %s1519_s10 = smov [#allocation3]  }
 0x2ff   : >> { %s1361_s0 = sshll.u32 %s1519_s10, 4  ;;  %s1362_s0 = int_to_ptr.vmem [resolvable:$false] %s1361_s0 }
 0x300   : >> { %s1363_s11 = scalar_lea.vmem %s1362_s0, 1024  ;;  %p1364_p11 = scmp.lt.s32.totalorder %s869_s1, %s1362_s0 }
 0x301   : >> { %p1365_p12 = scmp.lt.s32.totalorder %s1363_s11, %s1359_s17 }
 0x303   : >> { %s1081_s30 = sshll.u32 %s856_s26, 4  ;;  %p1366_p7 = por %p1365_p12, %p1364_p11 }
 0x304   : >> { %s859_s5 = scalar_lea.hbm %s1932_s8, %s1081_s30 }
 0x305   : >> { %p1367_p8 = pnand %p1366_p7, %p1360_p10 }
 0x307   : >> { %1370 = shalt.err (!%p1367_p8)  }
 0x308   : >> { %s1371_s29 = scalar_lea.hbm %s859_s5, 16  ;;  %s1373_s16 = scalar_lea.hbm %s1932_s8, 2048 }
 0x309   : >> { %p1372_p3 = scmp.ne.s32.totalorder %s859_s5, %s1371_s29  ;;  %p1374_p13 = scmp.lt.s32.totalorder %s859_s5, %s1932_s8 }
 0x30a   : >> { %p1375_p0 = scmp.lt.s32.totalorder %s1373_s16, %s1371_s29 }
 0x30c   : >> { %p1376_p1 = por %p1375_p0, %p1374_p13 }
 0x30e   : >> { %p1377_p2 = pnand %p1376_p1, %p1372_p3 }
 0x310   : >> { %1380 = shalt.err (!%p1377_p2)  }
 0x311   : >> { %871 = dma.vmem_to_hbm [thread:$0]  %s869_s1, 16, %s859_s5, [#allocation5 + $0x1] }
 0x312   : >> { %s850_s23 = sadd.s32 1, %s1501_s23  }
 0x313   : >> { %p849_p4 = scmp.ge.s32.totalorder %s850_s23, %s1962_s2 }
 0x315   : > { %852 = sbr.rel (!%p849_p4) target bundleno = 762 (0x2fa), region = 195 }
 0x31a PF: > { %984 = sbr.rel (%p1079_p9) target bundleno = 808 (0x328), region = 200  ;;  %s1503_s4 = smov (!%p1079_p9), 0  }
 0x31f LB: >> { %1449 = dma.done.wait [#allocation5 + $0x1], 16  ;;  %s1505_s4 = sphi %s1503_s4, %s875_s4  }
 0x320   : >> { %1450 = vsyncadd [#allocation5 + $0x1], 4294967280  ;;  %s875_s4 = sadd.s32 1, %s1505_s4  }
 0x321   : >> { %p874_p5 = scmp.ge.s32.totalorder %s875_s4, %s1962_s2 }
 0x323   : > { %877 = sbr.rel (!%p874_p5) target bundleno = 799 (0x31f), region = 206 }
 0x328 PF: > { %s34_s22 = sadd.s32 1, %s1489_s22   ;;  %s1933_s18 = sld [smem:[#allocation23_spill]] }
 0x329   : > { %p31_p6 = scmp.ge.s32.totalorder %s34_s22, 17   ;;  %s1934_s15 = sld [smem:[#allocation28_spill]] }
 0x32a   : > { %s1935_s17 = sld [smem:[#allocation24_spill]]  ;;  %s1939_s1 = smov %s1457_s14 }
 0x32b   : > { %s1936_s24 = sld [smem:[#allocation25_spill]]  ;;  %s1941_s16 = smov %s1477_s19 }
 0x32c   : > { %s1937_s20 = sld [smem:[#allocation26_spill]] }
 0x32d   : > { %s1938_s23 = sld [smem:[#allocation27_spill]] }
 0x32e   : > { %s1940_s14 = smov %s1933_s18  ;;  %s1942_s18 = smov %s1485_s21 }
 0x32f   :  { %33 = sbr.rel (!%p31_p6) target bundleno = 35 (0x23), region = 217 }
 0x331   : > { %s1943_s19 = smov %s1936_s24 }
 0x333   : > { %s1944_s21 = smov %s1938_s23 }
 0x334   :  { %881 = vsyncpa [#allocation10], 1 }
 0x335   :  { %883 = vsyncpa [#allocation10 + $0x1], 1 }
 0x336   :  { %884 = vsyncpa [#allocation12], 1 }
 0x337   :  { %886 = vsyncpa [#allocation12 + $0x1], 1 }
 0x338   :  { %887 = vsyncmov [#allocation5] }
 0x33b   :  { %s888_s2 = vpop.sfrf %887 }
 0x33c   :  { %p1083_p9 = scmp.ne.s32.totalorder %s888_s2, 0 }
 0x33e   :  { %892 = shalt.err (%p1083_p9)  }
 0x33f   :  { %894 = vsyncmov [#allocation5 + $0x1] }
 0x342   :  { %s895_s9 = vpop.sfrf %894 }
 0x343   :  { %p1084_p10 = scmp.ne.s32.totalorder %s895_s9, 0 }
 0x345   :  { %899 = shalt.err (%p1084_p10)  }

</bundles_post_ra>
